<compile_context>
chip_gen: v7x
topology: tpu7x:2x2x1
jax: 0.10.0
libtpu: 0.0.40
codegen_flags: <defaults>
</compile_context>

<pallas_src>
import functools

import jax
import jax.numpy as jnp
from jax.experimental import pallas as pl
from jax.experimental.pallas import tpu as pltpu

_MIB = 1024 * 1024


def _round_up(x, m):
    return ((x + m - 1) // m) * m


def _round_down(x, m):
    return (x // m) * m


def _vmem_capacity_bytes():
    """Per-core VMEM capacity; conservative (v7x) fallback if unqueryable."""
    try:
        info = pltpu.get_tpu_info()
        cap = getattr(info, "vmem_capacity_bytes", None)
        if cap:
            return int(cap)
    except Exception:
        pass
    return 64 * _MIB  # v7x per-TensorCore VMEM (smallest of v5e/v6e/v7x)


def _supports_buffered():
    """True if this jax exposes BlockSpec(pipeline_mode=pl.Buffered(...))."""
    try:
        pl.BlockSpec((8, 128), lambda i: (0, 0), pipeline_mode=pl.Buffered(1))
        return True
    except Exception:
        return False


def _mlp_bil_kernel(ones_ref, xi_ref, xj_ref, w_ref, out_ref, acc_ref, *,
                    compute_dtype):
    # ones_ref : (8, hc)  compute dtype (constant, hoisted reduce operand)
    # xi_ref   : (tm, hc) HBM dtype     (cast happens in-kernel)
    # xj_ref   : (tm, H)  HBM dtype
    # w_ref    : (H, hc)  compute dtype (resident / per-chunk)
    # out_ref  : (1, tm)  lane-dense output block
    # acc_ref  : (8, tm)  f32 accumulator over the W-column chunks
    c = pl.program_id(1)

    @pl.when(c == 0)
    def _():
        acc_ref[...] = jnp.zeros_like(acc_ref)

    # Bilinear identity: sum((x_i @ W.T) * x_j, -1) == sum((x_j @ W) * x_i, -1)
    xj = xj_ref[...].astype(compute_dtype)                     # in-kernel cast
    y = jnp.dot(xj, w_ref[...],
                preferred_element_type=jnp.float32)            # (tm, hc) MXU
    prod = y * xi_ref[...].astype(jnp.float32)                 # (tm, hc) VPU

    # Lane-dense per-row reduce on the MXU: ones(8,hc) @ prod.T -> (8, tm),
    # so the tm row-sums land on the lane axis (unmasked (1, tm) store).
    # On the bf16 fast path `prod` is narrowed for the reduce; accumulation
    # stays f32 via preferred_element_type.
    rows = jax.lax.dot_general(
        ones_ref[...], prod.astype(compute_dtype),
        dimension_numbers=(((1,), (1,)), ((), ())),
        preferred_element_type=jnp.float32)                    # (8, tm)
    acc_ref[...] += rows

    @pl.when(c == pl.num_programs(1) - 1)
    def _():
        out_ref[...] = acc_ref[0:1, :].astype(out_ref.dtype)


def mlp_bil_predictor(x_i, x_j, weight, *, compute_dtype=jnp.bfloat16, tm=None):
    """forward(x_i, x_j) of MLPBilPredictor.

    `weight` is the PyTorch-style Linear weight [H, H] (out, in); it is used
    un-transposed via the bilinear identity.

    Performance default: operands are used in bf16 on the MXU with f32
    accumulation (fastest on v5e/v6e/v7x; v5e has no f32 MXU path).  This
    changes numerics slightly vs the fp32 PyTorch Linear — pass
    compute_dtype=jnp.float32 for a strict-parity (slower) path.
    x_i / x_j are streamed from HBM in the dtype the caller provides and cast
    inside the kernel (no extra wrapper-side pad/cast pass).
    """
    N, H = x_i.shape
    assert x_j.shape == (N, H) and weight.shape == (H, H)

    out_dtype = x_i.dtype
    xi_item = jnp.dtype(x_i.dtype).itemsize
    xj_item = jnp.dtype(x_j.dtype).itemsize
    w_item = jnp.dtype(compute_dtype).itemsize
    out_item = jnp.dtype(out_dtype).itemsize

    # ---- generation-aware VMEM budget (v7x 64 MiB/TC vs v5e/v6e 128 MiB) ----
    vmem_cap = _vmem_capacity_bytes()
    budget = min(int(0.75 * vmem_cap), 100 * _MIB)   # ~48 MiB v7x, ~96 MiB v6e

    # ---- W output-column chunking for large H (keeps v7x in VMEM) ----------
    hc = H
    w_budget = min(budget // 3, 16 * _MIB)
    while H * hc * w_item > w_budget and hc % 2 == 0 and (hc // 2) % 128 == 0:
        hc //= 2                                    # hc stays a divisor of H
    n_hc = H // hc

    # Single-buffer a large un-chunked W (constant index_map) when supported.
    use_single_w = (n_hc == 1 and H * hc * w_item > 4 * _MIB
                    and _supports_buffered())
    w_bufs = 1 if use_single_w else 2

    # ---- row-tile selection -------------------------------------------------
    # Per-tm-row VMEM bytes: double-buffered x_i/x_j tiles + f32 intermediates
    # (y, prod, bf16 copies) + output tiles + accumulator rows.
    per_tm = (2 * hc * xi_item + 2 * H * xj_item
              + 3 * hc * 4 + 2 * H
              + 2 * out_item + 8 * 4)
    fixed = w_bufs * H * hc * w_item + 2 * 8 * hc * w_item

    if tm is None:
        # >= ~1 MiB of DMA per input stream per grid step, within [512, 2048].
        tm_stream = _round_up(
            max(1, pl.cdiv(_MIB, H * max(xi_item, xj_item))), 128)
        desired = min(max(512, tm_stream), 2048)
        # Keep the parallel axis >= ~4 steps when N allows (v7x has 2 TCs).
        tm_cap_n = max(128, _round_down(pl.cdiv(N, 4), 128))
        # Fit the real footprint inside the budget.
        tm_cap_vmem = max(128, _round_down(max(0, budget - fixed) // per_tm, 128))
        tm = max(128, min(desired, tm_cap_n, tm_cap_vmem))
    assert tm % 128 == 0, "row tile must be a multiple of 128 (lane-dense out)"

    n_row_tiles = pl.cdiv(N, tm)     # ragged N: partial/OOB last block
    n_pad = n_row_tiles * tm
    grid = (n_row_tiles, n_hc)

    footprint = fixed + tm * per_tm
    vmem_limit = int(min(max(int(1.5 * footprint), 32 * _MIB),
                         int(0.9 * vmem_cap)))

    # W cast is one tiny H*H pass (no-op if already compute dtype); the big
    # x_i/x_j streams are NOT touched in the wrapper.
    w_c = weight.astype(compute_dtype)
    ones8 = jnp.ones((8, hc), compute_dtype)   # hoisted reduce operand

    if use_single_w:
        w_spec = pl.BlockSpec((H, hc), lambda i, c: (0, 0),
                              pipeline_mode=pl.Buffered(1))
    else:
        w_spec = pl.BlockSpec((H, hc), lambda i, c: (0, c))

    cost = pl.CostEstimate(
        flops=2 * N * H * H + N * H + 2 * 8 * N * H,
        transcendentals=0,
        bytes_accessed=(N * H * (xi_item + xj_item)
                        + H * H * w_item + 8 * H * w_item
                        + n_pad * out_item),
    )

    kernel = functools.partial(_mlp_bil_kernel, compute_dtype=compute_dtype)

    out2d = pl.pallas_call(
        kernel,
        out_shape=jax.ShapeDtypeStruct((1, n_pad), out_dtype),
        grid_spec=pltpu.PrefetchScalarGridSpec(
            num_scalar_prefetch=0,
            grid=grid,
            in_specs=[
                pl.BlockSpec((8, hc), lambda i, c: (0, 0)),    # ones (hoisted)
                pl.BlockSpec((tm, hc), lambda i, c: (i, c)),   # x_i tile/chunk
                pl.BlockSpec((tm, H), lambda i, c: (i, 0)),    # x_j row tile
                w_spec,                                        # W (resident/chunk)
            ],
            out_specs=pl.BlockSpec((1, tm), lambda i, c: (0, i)),  # lane-dense
            scratch_shapes=[pltpu.VMEM((8, tm), jnp.float32)],     # chunk acc
        ),
        compiler_params=pltpu.CompilerParams(
            dimension_semantics=("parallel", "arbitrary"),
            vmem_limit_bytes=vmem_limit,
        ),
        cost_estimate=cost,
    )(ones8, x_i, x_j, w_c)

    # OOB lanes of the last partial row block contain garbage; slice them off.
    return out2d[0, :N]


def _reference(x_i, x_j, weight):
    return jnp.sum((x_i @ weight.T) * x_j, axis=-1)


if __name__ == "__main__":
    N = 1000    # number of (i, j) node pairs (deliberately ragged vs tm)
    H = 128     # hidden_channels

    key = jax.random.PRNGKey(0)
    k1, k2, k3 = jax.random.split(key, 3)

    x_i = jax.random.normal(k1, (N, H), dtype=jnp.float32)
    x_j = jax.random.normal(k2, (N, H), dtype=jnp.float32)
    # Deterministic stand-in for nn.Linear kaiming-uniform: U(-1/sqrt(H), 1/sqrt(H))
    bound = 1.0 / (H ** 0.5)
    weight = jax.random.uniform(k3, (H, H), dtype=jnp.float32,
                                minval=-bound, maxval=bound)

    ref = _reference(x_i, x_j, weight)

    # Strict-parity path (f32 everywhere).
    out_f32 = jax.block_until_ready(
        mlp_bil_predictor(x_i, x_j, weight, compute_dtype=jnp.float32))
    assert out_f32.shape == (N,)
    assert jnp.allclose(out_f32, ref, atol=1e-3, rtol=1e-4), "f32 mismatch vs reference"

    # Performance default (bf16 operands, f32 accumulation): looser tolerance.
    out_bf16 = jax.block_until_ready(mlp_bil_predictor(x_i, x_j, weight))
    assert out_bf16.shape == (N,)
    assert jnp.allclose(out_bf16, ref, atol=0.5, rtol=0.05), "bf16 mismatch vs reference"

    print("KERNEL_OK")
</pallas_src>

<mosaic_0001>
module attributes {stable_mosaic.version = 11 : i64} {
  func.func @_mlp_bil_kernel(%arg0: i32, %arg1: i32, %arg2: memref<8x128xf32, #tpu.memory_space<vmem>>, %arg3: memref<128x128xf32, #tpu.memory_space<vmem>>, %arg4: memref<128x128xf32, #tpu.memory_space<vmem>>, %arg5: memref<128x128xf32, #tpu.memory_space<vmem>>, %arg6: memref<1x128xf32, #tpu.memory_space<vmem>>, %arg7: memref<8x128xf32, #tpu.memory_space<vmem>>) attributes {dimension_semantics = [#tpu.dimension_semantics<parallel>, #tpu.dimension_semantics<arbitrary>], iteration_bounds = array<i64: 8, 1>, scalar_prefetch = 0 : i64, scratch_operands = 1 : i64, tpu.core_type = #tpu.core_type<tc>, window_params = [{pipeline_mode = #tpu.pipeline_mode<synchronous>, transform_indices = @transform_0, window_bounds = array<i64: 8, 128>}, {transform_indices = @transform_1, window_bounds = array<i64: 128, 128>}, {transform_indices = @transform_2, window_bounds = array<i64: 128, 128>}, {transform_indices = @transform_3, window_bounds = array<i64: 128, 128>}, {transform_indices = @transform_4, window_bounds = array<i64: 1, 128>}]} {
    %c0_i32 = arith.constant 0 : i32
    %0 = arith.cmpi eq, %arg1, %c0_i32 : i32
    %1 = arith.extui %0 : i1 to i32
    %c0_i32_0 = arith.constant 0 : i32
    %2 = arith.cmpi ne, %1, %c0_i32_0 : i32
    scf.if %2 {
      %cst_15 = arith.constant 0.000000e+00 : f32
      %16 = vector.broadcast %cst_15 : f32 to vector<8x128xf32>
      %c0_16 = arith.constant 0 : index
      %c0_17 = arith.constant 0 : index
      %17 = vector.load %arg7[%c0_16, %c0_17] : memref<8x128xf32, #tpu.memory_space<vmem>>, vector<8x128xf32>
      tpu.vector_store %arg7[%c0_16, %c0_17], %16 {strides = array<i32>} : memref<8x128xf32, #tpu.memory_space<vmem>>, vector<8x128xf32>,
    } else {
    }
    %c0 = arith.constant 0 : index
    %c0_1 = arith.constant 0 : index
    %3 = vector.load %arg4[%c0, %c0_1] : memref<128x128xf32, #tpu.memory_space<vmem>>, vector<128x128xf32>
    %c0_2 = arith.constant 0 : index
    %c0_3 = arith.constant 0 : index
    %4 = vector.load %arg5[%c0_2, %c0_3] : memref<128x128xf32, #tpu.memory_space<vmem>>, vector<128x128xf32>
    %cst = arith.constant dense<0.000000e+00> : vector<128x128xf32>
    %5 = tpu.matmul %3, %4, %cst {dimension_numbers = #tpu.dot_dimension_numbers<[1], [0], [0], [1], [0, 0, 1, 1], [], []>} : vector<128x128xf32>, vector<128x128xf32>, vector<128x128xf32> -> vector<128x128xf32>
    %c0_4 = arith.constant 0 : index
    %c0_5 = arith.constant 0 : index
    %6 = vector.load %arg3[%c0_4, %c0_5] : memref<128x128xf32, #tpu.memory_space<vmem>>, vector<128x128xf32>
    %7 = arith.mulf %5, %6 : vector<128x128xf32>
    %c0_6 = arith.constant 0 : index
    %c0_7 = arith.constant 0 : index
    %8 = vector.load %arg2[%c0_6, %c0_7] : memref<8x128xf32, #tpu.memory_space<vmem>>, vector<8x128xf32>
    %cst_8 = arith.constant dense<0.000000e+00> : vector<8x128xf32>
    %9 = tpu.matmul %8, %7, %cst_8 {dimension_numbers = #tpu.dot_dimension_numbers<[1], [1], [0], [0], [0, 0, 1, 0], [], []>} : vector<8x128xf32>, vector<128x128xf32>, vector<8x128xf32> -> vector<8x128xf32>
    %c0_9 = arith.constant 0 : index
    %c0_10 = arith.constant 0 : index
    %10 = vector.load %arg7[%c0_9, %c0_10] : memref<8x128xf32, #tpu.memory_space<vmem>>, vector<8x128xf32>
    %11 = arith.addf %10, %9 : vector<8x128xf32>
    %c0_11 = arith.constant 0 : index
    %c0_12 = arith.constant 0 : index
    %12 = vector.load %arg7[%c0_11, %c0_12] : memref<8x128xf32, #tpu.memory_space<vmem>>, vector<8x128xf32>
    tpu.vector_store %arg7[%c0_11, %c0_12], %11 {strides = array<i32>} : memref<8x128xf32, #tpu.memory_space<vmem>>, vector<8x128xf32>,
    %c0_i32_13 = arith.constant 0 : i32
    %13 = arith.cmpi eq, %arg1, %c0_i32_13 : i32
    %14 = arith.extui %13 : i1 to i32
    %c0_i32_14 = arith.constant 0 : i32
    %15 = arith.cmpi ne, %14, %c0_i32_14 : i32
    scf.if %15 {
      %c0_15 = arith.constant 0 : index
      %c0_16 = arith.constant 0 : index
      %16 = vector.load %arg7[%c0_15, %c0_16] : memref<8x128xf32, #tpu.memory_space<vmem>>, vector<1x128xf32>
      %c0_17 = arith.constant 0 : index
      %c0_18 = arith.constant 0 : index
      %17 = vector.load %arg6[%c0_17, %c0_18] : memref<1x128xf32, #tpu.memory_space<vmem>>, vector<1x128xf32>
      tpu.vector_store %arg6[%c0_17, %c0_18], %16 {strides = array<i32>} : memref<1x128xf32, #tpu.memory_space<vmem>>, vector<1x128xf32>,
    } else {
    }
    return
  }
  func.func @transform_0(%arg0: i32, %arg1: i32) -> (i32, i32) {
    %c0_i32 = arith.constant 0 : i32
    %c0_i32_0 = arith.constant 0 : i32
    %c0_i32_1 = arith.constant 0 : i32
    return %c0_i32, %c0_i32_0 : i32, i32
  }
  func.func @transform_1(%arg0: i32, %arg1: i32) -> (i32, i32) {
    %c0_i32 = arith.constant 0 : i32
    return %arg0, %arg1 : i32, i32
  }
  func.func @transform_2(%arg0: i32, %arg1: i32) -> (i32, i32) {
    %c0_i32 = arith.constant 0 : i32
    %c0_i32_0 = arith.constant 0 : i32
    return %arg0, %c0_i32 : i32, i32
  }
  func.func @transform_3(%arg0: i32, %arg1: i32) -> (i32, i32) {
    %c0_i32 = arith.constant 0 : i32
    %c0_i32_0 = arith.constant 0 : i32
    return %c0_i32, %arg1 : i32, i32
  }
  func.func @transform_4(%arg0: i32, %arg1: i32) -> (i32, i32) {
    %c0_i32 = arith.constant 0 : i32
    %c0_i32_0 = arith.constant 0 : i32
    return %c0_i32, %arg0 : i32, i32
  }
}

</mosaic_0001>

<bundles_post_ra>
// kernel: tpu_custom_call.1
= control target key start
LH: loop header
LB: loop body
LE: loop exit
PB: predicated region body
PF: predicated region fallthrough
CT: control target
= control target key end

     0   :  { %s1644_s0 = inlined_call_operand.hbm [shape: f32[8,128], index: 0, kind: input, shape index: {}]   ;;  %s1645_s1 = inlined_call_operand.hbm [shape: f32[1000,128], index: 1, kind: input, shape index: {}]   ;;  %s1646_s2 = inlined_call_operand.hbm [shape: f32[1000,128], index: 2, kind: input, shape index: {}]   ;;  %s1647_s3 = inlined_call_operand.hbm [shape: f32[128,128], index: 3, kind: input, shape index: {}]   ;;  %s1648_s4 = inlined_call_operand.hbm [shape: f32[1,1024], index: 4, kind: output, shape index: {}]  }
   0x1   :  { %1653 = sst [smem:[#allocation16_spill]] %s1644_s0 }
   0x2   :  { %1654 = sst [smem:[#allocation17_spill]] %s1645_s1 }
   0x3   :  { %9 = vsyncpa [#allocation4], 0 }
   0x4   :  { %10 = vsyncpa [#allocation7], 0 }
   0x5   :  { %12 = vsyncpa [#allocation7 + $0x1], 0 }
   0x6   :  { %13 = vsyncpa [#allocation10], 0 }
   0x7   :  { %14 = vsyncpa [#allocation5], 0 }
   0x8   :  { %16 = vsyncpa [#allocation5 + $0x1], 0  ;;  %s1306_s15 = smov 0   ;;  %s1308_s16 = smov 0  }
   0x9   :  { %s1310_s17 = smov 0   ;;  %s1312_s18 = smov 0  }
   0xa   :  { %s1314_s19 = smov 0   ;;  %s1316_s20 = smov 0  }
   0xb LB: > { %s1337_s21 = sadd.s32 4294967295, %s1265_s20   ;;  %s751_s22 = sadd.s32 4294967294, %s1265_s20   ;;  %s1265_s20 = sphi %s1316_s20, %s22_s20   ;;  %s1261_s19 = sphi %s1314_s19, %s1677_s19   ;;  %s1257_s18 = sphi %s1312_s18, %s1676_s18   ;;  %s1253_s17 = sphi %s1310_s17, %s1675_s17   ;;  %s1249_s16 = sphi %s1308_s16, %s1674_s16   ;;  %s1245_s15 = sphi %s1306_s15, %s1673_s15  }
   0xc   : > { %s34_s23 = sadd.s32 1, %s1261_s19  ;;  %s64_s24 = sadd.s32 1, %s1253_s17 }
   0xd   : > { %p36_p0 = scmp.ge.s32.totalorder %s34_s23, 8  ;;  %p71_p1 = scmp.ne.s32.totalorder %s1253_s17, %s1249_s16 }
   0xe   : > { %p72_p2 = scmp.eq.s32.totalorder %s1265_s20, 0  ;;  %p77_p3 = scmp.ne.s32.totalorder %s1249_s16, %s1245_s15 }
   0xf   : > { %s1679_s23 = smov (%p36_p0, %s34_s23), 0  ;;  %p1649_p5 = scmp.eq.s32.totalorder %s1337_s21, 0 }
  0x10   : > { %p1349_p4 = por %p72_p2, %p71_p1  ;;  %s59_s26 = ssub.s32 %s1261_s19, %s1679_s23 }
  0x11   : > { %p153_p6 = scmp.eq.s32.totalorder %s1337_s21, 7  ;;  %p62_p7 = scmp.eq.s32.totalorder %s59_s26, 0 }
  0x12   : > { %s1655_s25 = scalar_select %p1349_p4, 1, 0 }
  0x13   : > { %p1359_p8 = por %p1649_p5, %p77_p3  ;;  %p1363_p9 = por %p153_p6, %p71_p1 }
  0x14   : > { %p159_p10 = scmp.eq.s32.totalorder %s751_s22, 7  ;;  %p752_p12 = scmp.ge.s32.totalorder %s1265_s20, 1 }
  0x15   : > { %s1656_s27 = scalar_select %p1359_p8, 1, 0 }
  0x16   : > { %s1657_s28 = scalar_select %p1363_p9, 1, 0 }
  0x17   : > { %s1368_s29 = scalar_select %p62_p7, %s1253_s17, %s64_s24  }
  0x18   : > { %p1370_p11 = por %p159_p10, %p77_p3  ;;  %p166_p13 = scmp.lt.s32.totalorder %s1265_s20, 9 }
  0x19   : > { %s1267_s6 = smov [#allocation3]   ;;  %s1268_s8 = smov [#allocation9]  }
  0x1a   : > { %s1658_s30 = scalar_select %p1370_p11, 1, 0 }
  0x1b   : > { %p1376_p0 = pnand %p752_p12, %p166_p13  ;;  %s179_s7 = sshll.u32 %s1267_s6, 4  ;;  %s180_s7 = int_to_ptr.vmem [resolvable:$true] %s179_s7 }
  0x1c   : > { %s191_s9 = sshll.u32 %s1268_s8, 4  ;;  %s1661_s0 = sld [smem:[#allocation16_spill]]  ;;  %s1388_s9 = int_to_ptr.vmem [resolvable:$true] %s191_s9 }
  0x1d   : > { %s1659_s5 = scalar_select %p1376_p0, 1, 0 }
  0x1e   : > { %p988_p1 = pneg %p1376_p0 }
  0x20   : > { %p1384_p2 = pnand %p988_p1, %p1649_p5 }
  0x22   : > { %s1063_s13 = scalar_lea.hbm %s1661_s0, 128  ;;  %p1065_p6 = pneg %p1384_p2 }
  0x23   : > { %p1064_p3 = scmp.ne.s32.totalorder %s1661_s0, %s1063_s13  ;;  %p1070_p12 = scmp.lt.u32.totalorder %s1063_s13, %s1661_s0 }
  0x25   : > { %p1066_p7 = pnand %p1065_p6, %p1064_p3 }
  0x27   : > { %p1067_p10 = pneg %p1066_p7 }
  0x29   : > { %p1072_p13 = pnand %p1070_p12, %p1067_p10 }
  0x2b   : > { %1075 = shalt.err (!%p1072_p13)
}
  0x2c   : > { %s1076_s6 = scalar_lea.vmem %s180_s7, 128  ;;  %p1084_p9 = scmp.lt.s32.totalorder %s180_s7, %s180_s7 }
  0x2d   : > { %p1077_p1 = scmp.ne.s32.totalorder %s180_s7, %s1076_s6  ;;  %p1085_p8 = scmp.lt.s32.totalorder %s1076_s6, %s1076_s6 }
  0x2f   : > { %p1079_p5 = pnand %p1077_p1, %p1065_p6  ;;  %p1086_p0 = por %p1085_p8, %p1084_p9 }
  0x31   : > { %p1080_p11 = pneg %p1079_p5 }
  0x33   : > { %p1087_p4 = pnand %p1086_p0, %p1080_p11 }
  0x35   : > { %1090 = shalt.err (!%p1087_p4)
}
  0x36   : > { %991 = dma.hbm_to_vmem [thread:$0]  (!%p1384_p2), %s1661_s0, 128, %s180_s7, [#allocation4]  }
  0x37   : > { %s1091_s14 = scalar_lea.hbm %s1647_s3, 2048 }
  0x38   : > { %p1092_p5 = scmp.ne.s32.totalorder %s1647_s3, %s1091_s14  ;;  %p1098_p4 = scmp.lt.u32.totalorder %s1091_s14, %s1647_s3 }
  0x3a   : > { %p1094_p8 = pnand %p1092_p5, %p1065_p6 }
  0x3c   : > { %p1095_p9 = pneg %p1094_p8 }
  0x3e   : > { %p1100_p11 = pnand %p1098_p4, %p1095_p9 }
  0x40   : > { %1103 = shalt.err (!%p1100_p11)
}
  0x41   : > { %s1104_s7 = scalar_lea.vmem %s1388_s9, 2048  ;;  %p1112_p10 = scmp.lt.s32.totalorder %s1388_s9, %s1388_s9 }
  0x42   : > { %p1105_p0 = scmp.ne.s32.totalorder %s1388_s9, %s1104_s7  ;;  %p1113_p12 = scmp.lt.s32.totalorder %s1104_s7, %s1104_s7 }
  0x44   : > { %p1107_p3 = pnand %p1105_p0, %p1065_p6  ;;  %p1114_p13 = por %p1113_p12, %p1112_p10 }
  0x46   : > { %p1108_p7 = pneg %p1107_p3 }
  0x48   : > { %p1115_p1 = pnand %p1114_p13, %p1108_p7 }
  0x4a   : > { %1118 = shalt.err (!%p1115_p1)
}
  0x4b   : > { %s1269_s8 = smov 128   ;;  %s1270_s11 = smov 8  }
  0x4c   : > { %994 = dma.hbm_to_vmem [thread:$0]  (!%p1384_p2), %s1647_s3, 2048, %s1388_s9, [#allocation10], %s1269_s8, %s1269_s8, %s1270_s11  }
  0x4d   : > { %p755_p5 = scmp.ge.s32.totalorder %s1265_s20, 8 }
  0x4e   : > { %p1662_p6 = scmp.ne.s32.totalorder (!%p755_p5), %s1655_s25, 0 }
  0x4f   : > { %201 = sbr.rel (%p755_p5) target bundleno = 163 (0xa3), region = 24 }
  0x56   : > { %204 = sbr.rel (!%p1662_p6) target bundleno = 126 (0x7e), region = 28  ;;  %s205_s14 = sand.u32 (%p1662_p6), 1, %s1265_s20  }
  0x57   : > { %s207_s22 = sand.u32 (%p1662_p6), 1, %s1253_s17   ;;  %s757_s26 = sshll.u32 (%p1662_p6), %s1261_s19, 4 }
  0x58   : > { %s756_s24 = sshll.u32 (%p1662_p6), %s207_s22, 7  ;;  %s211_s6 = ssub.s32 (%p1662_p6), 125, %s757_s26 }
  0x59   : > { %p212_p8 = scmp.lt.s32.totalorder (%p1662_p6), %s211_s6, 16  ;;  %s1446_s7 = scalar_lea.sflag (%p1662_p6), [#allocation7], %s205_s14 }
  0x5a   : > { %s209_s8 = scalar_lea.vmem (%p1662_p6), [#allocation6], %s756_s24 }
  0x5d   : > { %s1681_s6 = smov (!%p212_p8, %s211_s6), 16 }
  0x5e   : > { %s1443_s10 = sshll.u32 %s1681_s6, 7 }
  0x5f   : > { %s216_s9 = ssub.s32 2048, %s1443_s10 }
  0x60   : > { %217 = vsyncadd %s1446_s7, %s216_s9  ;;  %p759_p2 = scmp.ne.s32.totalorder %s1443_s10, 0  ;;  %s778_s11 = sshll.u32 %s1261_s19, 11 }
  0x61   : > { %s1663_s1 = sld [smem:[#allocation17_spill]]  ;;  %s223_s14 = sshll.u32 %s209_s8, 4  ;;  %s1456_s14 = int_to_ptr.vmem [resolvable:$true] %s223_s14 }
  0x67   : > { %s1454_s22 = scalar_lea.hbm %s1663_s1, %s778_s11  ;;  %s1123_s9 = scalar_lea.hbm %s1663_s1, 16000 }
  0x68   : > { %s1119_s24 = scalar_lea.hbm %s1454_s22, %s1443_s10  ;;  %p1124_p0 = scmp.lt.u32.totalorder %s1454_s22, %s1663_s1 }
  0x69   : > { %p1120_p9 = scmp.ne.s32.totalorder %s1454_s22, %s1119_s24  ;;  %p1125_p3 = scmp.lt.u32.totalorder %s1123_s9, %s1119_s24 }
  0x6a   : > { %p1127_p10 = scmp.lt.u32.totalorder %s1119_s24, %s1454_s22 }
  0x6b   : > { %p1121_p4 = pnand %p1120_p9, %p759_p2  ;;  %p1126_p7 = por %p1125_p3, %p1124_p0 }
  0x6d   : > { %p1122_p11 = pneg %p1121_p4  ;;  %p1128_p12 = por %p1127_p10, %p1126_p7 }
  0x6f   : > { %p1129_p13 = pnand %p1128_p12, %p1122_p11 }
  0x71   : > { %1132 = shalt.err (!%p1129_p13)
}
  0x72   : > { %s1133_s8 = scalar_lea.vmem %s1456_s14, %s1443_s10  ;;  %s1271_s11 = smov [#allocation6]  }
  0x73   : > { %p1134_p1 = scmp.ne.s32.totalorder %s1456_s14, %s1133_s8  ;;  %s1137_s13 = sshll.u32 %s1271_s11, 4  ;;  %s1138_s13 = int_to_ptr.vmem [resolvable:$false] %s1137_s13 }
  0x74   : > { %s1139_s0 = scalar_lea.vmem %s1138_s13, 4096  ;;  %p1140_p8 = scmp.lt.s32.totalorder %s1456_s14, %s1138_s13 }
  0x75   : > { %p1135_p5 = pnand %p1134_p1, %p759_p2  ;;  %p1141_p9 = scmp.lt.s32.totalorder %s1139_s0, %s1133_s8 }
  0x77   : > { %p1136_p6 = pneg %p1135_p5  ;;  %p1142_p4 = por %p1141_p9, %p1140_p8 }
  0x79   : > { %p1143_p0 = pnand %p1142_p4, %p1136_p6 }
  0x7b   : > { %1146 = shalt.err (!%p1143_p0)
}
  0x7c   : > { %s1272_s24 = smov 128   ;;  %s1273_s26 = smov 8  }
  0x7d   : > { %229 = dma.hbm_to_vmem [thread:$0]  (%p759_p2), %s1454_s22, %s1443_s10, %s1456_s14, %s1446_s7, %s1272_s24, %s1272_s24, %s1273_s26  }
  0x7e PF: > { %p1664_p11 = scmp.ne.s32.totalorder %s1655_s25, 0 }
  0x7f   : > { %s233_s6 = sand.u32 (%p1664_p11), 1, %s1265_s20   ;;  %s235_s9 = sand.u32 (%p1664_p11), 1, %s1253_s17  }
  0x80   : > { %232 = sbr.rel (!%p1664_p11) target bundleno = 163 (0xa3), region = 32  ;;  %s763_s12 = sshll.u32 (%p1664_p11), %s235_s9, 7 }
  0x81   : > { %s764_s8 = sshll.u32 (%p1664_p11), %s1261_s19, 4  ;;  %s1491_s1 = scalar_lea.sflag (%p1664_p11), [#allocation7], %s233_s6 }
  0x82   : > { %s239_s11 = ssub.s32 (%p1664_p11), 125, %s764_s8  ;;  %s237_s10 = scalar_lea.vmem (%p1664_p11), [#allocation8], %s763_s12 }
  0x83   : > { %p240_p3 = scmp.lt.s32.totalorder (%p1664_p11), %s239_s11, 16 }
  0x87   : > { %s1683_s11 = smov (!%p240_p3, %s239_s11), 16 }
  0x88   : > { %s1488_s13 = sshll.u32 %s1683_s11, 7 }
  0x89   : > { %s244_s0 = ssub.s32 2048, %s1488_s13 }
  0x8a   : > { %245 = vsyncadd %s1491_s1, %s244_s0  ;;  %p766_p2 = scmp.ne.s32.totalorder %s1488_s13, 0  ;;  %s779_s25 = sshll.u32 %s1261_s19, 11 }
  0x8b   : > { %s1499_s14 = scalar_lea.hbm %s1646_s2, %s779_s25  ;;  %s250_s24 = sshll.u32 %s237_s10, 4  ;;  %s1501_s24 = int_to_ptr.vmem [resolvable:$true] %s250_s24 }
  0x8c   : > { %s1147_s26 = scalar_lea.hbm %s1499_s14, %s1488_s13  ;;  %s1151_s12 = scalar_lea.hbm %s1646_s2, 16000 }
  0x8d   : > { %p1148_p7 = scmp.ne.s32.totalorder %s1499_s14, %s1147_s26  ;;  %p1152_p13 = scmp.lt.u32.totalorder %s1499_s14, %s1646_s2 }
  0x8e   : > { %p1153_p1 = scmp.lt.u32.totalorder %s1151_s12, %s1147_s26  ;;  %p1155_p6 = scmp.lt.u32.totalorder %s1147_s26, %s1499_s14 }
  0x8f   : > { %p1149_p10 = pnand %p1148_p7, %p766_p2 }
  0x90   : > { %p1154_p5 = por %p1153_p1, %p1152_p13 }
  0x91   : > { %p1150_p12 = pneg %p1149_p10 }
  0x92   : > { %p1156_p8 = por %p1155_p6, %p1154_p5 }
  0x94   : > { %p1157_p9 = pnand %p1156_p8, %p1150_p12 }
  0x96   : > { %1160 = shalt.err (!%p1157_p9)
}
  0x97   : > { %s1161_s0 = scalar_lea.vmem %s1501_s24, %s1488_s13  ;;  %s1274_s10 = smov [#allocation8]  }
  0x98   : > { %p1162_p4 = scmp.ne.s32.totalorder %s1501_s24, %s1161_s0  ;;  %s1165_s25 = sshll.u32 %s1274_s10, 4  ;;  %s1166_s25 = int_to_ptr.vmem [resolvable:$false] %s1165_s25 }
  0x99   : > { %s1167_s7 = scalar_lea.vmem %s1166_s25, 4096  ;;  %p1168_p3 = scmp.lt.s32.totalorder %s1501_s24, %s1166_s25 }
  0x9a   : > { %p1163_p0 = pnand %p1162_p4, %p766_p2  ;;  %p1169_p7 = scmp.lt.s32.totalorder %s1167_s7, %s1161_s0 }
  0x9c   : > { %p1164_p11 = pneg %p1163_p0  ;;  %p1170_p10 = por %p1169_p7, %p1168_p3 }
  0x9e   : > { %p1171_p13 = pnand %p1170_p10, %p1164_p11 }
  0xa0   : > { %1174 = shalt.err (!%p1171_p13)
}
  0xa1   : > { %s1275_s22 = smov 128   ;;  %s1276_s26 = smov 8  }
  0xa2   : > { %256 = dma.hbm_to_vmem [thread:$0]  (%p766_p2), %s1499_s14, %s1488_s13, %s1501_s24, %s1491_s1, %s1275_s22, %s1275_s22, %s1276_s26  }
  0xa3 PF: > { %p1665_p12 = scmp.ne.s32.totalorder %s1659_s5, 0 }
  0xa4   : > { %p1666_p1 = scmp.eq.s32.totalorder (!%p1665_p12), %s1337_s21, 0 }
  0xa5   : > { %262 = sbr.rel (%p1665_p12) target bundleno = 730 (0x2da), region = 36 }
  0xac   : > { %1228 = dma.done.wait (%p1666_p1), [#allocation4], 128   ;;  %p1667_p5 = pmov %p1666_p1 }
  0xad   : > { %s268_s6 = sand.u32 1, %s1337_s21   ;;  %s1536_s9 = sand.u32 1, %s1249_s16  }
  0xae   : > { %1230 = vsyncadd (%p1667_p5), [#allocation4], 4294967168  ;;  %s772_s12 = sshll.u32 %s1536_s9, 7  ;;  %s269_s1 = scalar_lea.sflag [#allocation7], %s268_s6 }
  0xaf   : > { %s1539_s13 = scalar_lea.vmem [#allocation6], %s772_s12  ;;  %p1668_p2 = scmp.ne.s32.totalorder %s1656_s27, 0 }
  0xb1   : > { %1232 = dma.done.wait (%p1668_p2), %s269_s1, 4096  }
  0xb2   : > { %1234 = vsyncadd (%p1668_p2), %s269_s1, 4294963200  ;;  %s1545_s5 = scalar_lea.vmem [#allocation8], %s772_s12  ;;  %p1669_p6 = pmov %p1666_p1 }
  0xb3   : > { %p1670_p8 = pmov %p1666_p1 }
  0xb4   : > { %1236 = dma.done.wait (%p1669_p6), [#allocation10], 2048  }
  0xb5   : > { %1238 = vsyncadd (%p1670_p8), [#allocation10], 4294965248  ;;  %v345_v0 = vld [vmem:[#allocation9] sm:$0xff]  ;;  %v346_v1 = vld [vmem:[#allocation9 + $0x8] sm:$0xff]  ;;  %v1277_v40 = vmov 0.0|0.0   ;;  %vm1278_vm0 = vmmov 0  }
  0xb6   : > { %v347_v2 = vld [vmem:[#allocation9 + $0x10] sm:$0xff]  ;;  %v920_v3 = vpack.c.bf16 %v346_v1, %v345_v0  ;;  %v348_v4 = vld [vmem:[#allocation9 + $0x18] sm:$0xff]  ;;  %v349_v6 = vld [vmem:[#allocation9 + $0x20] sm:$0xff]  ;;  %952 = vmatprep.subr.bf16.mxu1 %v1277_v40  ;;  %v1279_v41 = vmov 0.0   ;;  %s775_s21 = sshll.u32 %s1257_s18, 4  ;;  %s313_s27 = scalar_lea.vmem [#allocation11], %s1536_s9 }
  0xb7   : > { %v924_v5 = vpack.c.bf16 %v348_v4, %v347_v2  ;;  %v350_v7 = vld [vmem:[#allocation9 + $0x28] sm:$0xff]  ;;  %v329_v9 = vld [vmem:[%s1545_s5] sm:$0xff]  ;;  %v351_v10 = vld [vmem:[#allocation9 + $0x30] sm:$0xff]  ;;  %917 = vmatprep.mubr.msk.f32.mxu1 %vm1278_vm0, %v1279_v41  ;;  %s630_s14 = sshll.u32 %s313_s27, 4  ;;  %s1596_s11 = scalar_lea.hbm %s1648_s4, %s775_s21  ;;  %s1598_s14 = int_to_ptr.vmem [resolvable:$true] %s630_s14 }
  0xb8   : > { %921 = vmatprep.subr.bf16.mxu0 %v920_v3  ;;  %v928_v8 = vpack.c.bf16 %v350_v7, %v349_v6  ;;  %v352_v11 = vld [vmem:[#allocation9 + $0x38] sm:$0xff]  ;;  %861 = vmatprep.mubr.f32.mxu0 %v329_v9  ;;  %v353_v13 = vld [vmem:[#allocation9 + $0x40] sm:$0xff]  ;;  %v354_v14 = vld [vmem:[#allocation9 + $0x48] sm:$0xff]  ;;  %s618_s0 = scalar_lea.sflag [#allocation5], %s1536_s9  ;;  %s1175_s10 = scalar_lea.vmem %s1598_s14, 16 }
  0xb9   : > { %923 = vmatpush3.bf16.msra.mxu0 %v920_v3  ;;  %v932_v12 = vpack.c.bf16 %v352_v11, %v351_v10  ;;  %v936_v15 = vpack.c.bf16 %v354_v14, %v353_v13  ;;  %v355_v16 = vld [vmem:[#allocation9 + $0x50] sm:$0xff]  ;;  %v356_v17 = vld [vmem:[#allocation9 + $0x58] sm:$0xff]  ;;  %v357_v19 = vld [vmem:[#allocation9 + $0x60] sm:$0xff]  ;;  %p1176_p9 = scmp.ne.s32.totalorder %s1598_s14, %s1175_s10  ;;  %p1671_p4 = scmp.ne.s32.totalorder %s1657_s28, 0 }
  0xba   : > { %925 = vmatprep.subr.bf16.mxu0 %v924_v5  ;;  %v940_v18 = vpack.c.bf16 %v356_v17, %v355_v16  ;;  %v358_v20 = vld [vmem:[#allocation9 + $0x68] sm:$0xff]  ;;  %v359_v22 = vld [vmem:[#allocation9 + $0x70] sm:$0xff]  ;;  %v360_v23 = vld [vmem:[#allocation9 + $0x78] sm:$0xff]  ;;  %s1280_s18 = smov [#allocation11]  }
  0xbb   : > { %v944_v21 = vpack.c.bf16 %v358_v20, %v357_v19  ;;  %v948_v24 = vpack.c.bf16 %v360_v23, %v359_v22  ;;  %v330_v25 = vld [vmem:[%s1545_s5 + $0x8] sm:$0xff]  ;;  %v331_v26 = vld [vmem:[%s1545_s5 + $0x10] sm:$0xff]  ;;  %v332_v27 = vld [vmem:[%s1545_s5 + $0x18] sm:$0xff]  ;;  %p1177_p0 = pnand %p1176_p9, %p1671_p4  ;;  %s1179_s25 = sshll.u32 %s1280_s18, 4  ;;  %s1180_s25 = int_to_ptr.vmem [resolvable:$false] %s1179_s25 }
  0xbc   : > { %v333_v28 = vld [vmem:[%s1545_s5 + $0x20] sm:$0xff]  ;;  %v334_v29 = vld [vmem:[%s1545_s5 + $0x28] sm:$0xff]  ;;  %v335_v30 = vld [vmem:[%s1545_s5 + $0x30] sm:$0xff]  ;;  %s1181_s7 = scalar_lea.vmem %s1180_s25, 32  ;;  %p1182_p3 = scmp.lt.s32.totalorder %s1598_s14, %s1180_s25 }
  0xbd   : > { %927 = vmatpush3.bf16.msra.mxu0 %v924_v5  ;;  %v336_v31 = vld [vmem:[%s1545_s5 + $0x38] sm:$0xff]  ;;  %v337_v32 = vld [vmem:[%s1545_s5 + $0x40] sm:$0xff]  ;;  %v338_v33 = vld [vmem:[%s1545_s5 + $0x48] sm:$0xff]  ;;  %p1178_p11 = pneg %p1177_p0  ;;  %p1183_p7 = scmp.lt.s32.totalorder %s1181_s7, %s1175_s10 }
  0xbe   : > { %929 = vmatprep.subr.bf16.mxu0 %v928_v8  ;;  %v339_v34 = vld [vmem:[%s1545_s5 + $0x50] sm:$0xff]  ;;  %v340_v35 = vld [vmem:[%s1545_s5 + $0x58] sm:$0xff]  ;;  %v341_v36 = vld [vmem:[%s1545_s5 + $0x60] sm:$0xff] }
  0xbf   : > { %v342_v37 = vld [vmem:[%s1545_s5 + $0x68] sm:$0xff]  ;;  %v343_v38 = vld [vmem:[%s1545_s5 + $0x70] sm:$0xff]  ;;  %v344_v39 = vld [vmem:[%s1545_s5 + $0x78] sm:$0xff]  ;;  %p1184_p10 = por %p1183_p7, %p1182_p3 }
  0xc0   : > { %v507_v42 = vld [vmem:[%s1539_s13 + $0x8] sm:$0xff]  ;;  %v506_v43 = vld [vmem:[%s1539_s13] sm:$0xff]  ;;  %v509_v48 = vld [vmem:[%s1539_s13 + $0x18] sm:$0xff] }
  0xc1   : > { %931 = vmatpush3.bf16.msra.mxu0 %v928_v8  ;;  %v508_v49 = vld [vmem:[%s1539_s13 + $0x10] sm:$0xff]  ;;  %v511_v55 = vld [vmem:[%s1539_s13 + $0x28] sm:$0xff]  ;;  %v510_v56 = vld [vmem:[%s1539_s13 + $0x20] sm:$0xff]  ;;  %p1185_p13 = pnand %p1184_p10, %p1178_p11 }
  0xc2   : > { %933 = vmatprep.subr.bf16.mxu0 %v932_v12  ;;  %v513_v62 = vld [vmem:[%s1539_s13 + $0x38] sm:$0xff]  ;;  %v512_v63 = vld [vmem:[%s1539_s13 + $0x30] sm:$0xff]  ;;  %v515_v5 = vld [vmem:[%s1539_s13 + $0x48] sm:$0xff] }
  0xc3   : > { %v514_v6 = vld [vmem:[%s1539_s13 + $0x40] sm:$0xff]  ;;  %v516_v13 = vld [vmem:[%s1539_s13 + $0x50] sm:$0xff]  ;;  %v519_v19 = vld [vmem:[%s1539_s13 + $0x68] sm:$0xff] }
  0xc4   : > { %v518_v20 = vld [vmem:[%s1539_s13 + $0x60] sm:$0xff] }
  0xc5   : > { %935 = vmatpush3.bf16.msra.mxu0 %v932_v12  ;;  %v517_v12 = vld [vmem:[%s1539_s13 + $0x58] sm:$0xff] }
  0xc6   : > { %937 = vmatprep.subr.bf16.mxu0 %v936_v15 }
  0xc9   : > { %939 = vmatpush3.bf16.msra.mxu0 %v936_v15 }
  0xca   : > { %941 = vmatprep.subr.bf16.mxu0 %v940_v18 }
  0xcd   : > { %943 = vmatpush3.bf16.msra.mxu0 %v940_v18 }
  0xce   : > { %945 = vmatprep.subr.bf16.mxu0 %v944_v21 }
  0xd1   : > { %947 = vmatpush3.bf16.msra.mxu0 %v944_v21 }
  0xd2   : > { %949 = vmatprep.subr.bf16.mxu0 %v948_v24 }
  0xd5   : > { %951 = vmatpush3.bf16.msra.mxu0 %v948_v24 }
  0xd8   : > { %862 = vmatmul.mubr.f32.vlgmr.msra.gmra.mrb[0].mxu0 %v330_v25 }
  0xd9   : > { %864 = vmatprep.mubr.f32.mxu0 %v331_v26  ;;  %v521_v26 = vld [vmem:[%s1539_s13 + $0x78] sm:$0xff] }
  0xdc   : > { %865 = vmatmul.mubr.f32.gmra.mrb[2].mxu0 %v332_v27  ;;  %v520_v27 = vld [vmem:[%s1539_s13 + $0x70] sm:$0xff] }
  0xdd   : > { %867 = vmatprep.mubr.f32.mxu0 %v333_v28 }
  0xe0   : > { %868 = vmatmul.mubr.f32.gmra.mrb[4].mxu0 %v334_v29 }
  0xe1   : > { %870 = vmatprep.mubr.f32.mxu0 %v335_v30 }
  0xe4   : > { %871 = vmatmul.mubr.f32.gmra.mrb[6].mxu0 %v336_v31 }
  0xe5   : > { %873 = vmatprep.mubr.f32.mxu0 %v337_v32 }
  0xe8   : > { %874 = vmatmul.mubr.f32.gmra.mrb[8].mxu0 %v338_v33 }
  0xe9   : > { %876 = vmatprep.mubr.f32.mxu0 %v339_v34  ;;  %v538_v34 = vld [vmem:[#allocation3] sm:$0xff] }
  0xec   : > { %877 = vmatmul.mubr.f32.gmra.mrb[10].mxu0 %v340_v35 }
  0xed   : > { %879 = vmatprep.mubr.f32.mxu0 %v341_v36 }
  0xf0   : > { %880 = vmatmul.mubr.f32.gmra.mrb[12].mxu0 %v342_v37 }
  0xf1   : > { %882 = vmatprep.mubr.f32.mxu0 %v343_v38 }
  0xf4   : > { %883 = vmatmul.mubr.f32.gmra.mrb[14].mxu0 %v344_v39 }
 0x1ab   : > { %v863_v44 = vpop.f32.mrb[0].mxu0 }
 0x1ac   : > { %v523_v45 = vmul.f32 %v863_v44, %v507_v42  ;;  %v427_v46 = vpop.f32.mrb[1].mxu0 }
 0x1ad   : > { %v522_v47 = vmul.f32 %v506_v43, %v427_v46 }
 0x1af   : > { %v953_v50 = vpack.c.bf16 %v523_v45, %v522_v47  ;;  %v866_v51 = vpop.f32.mrb[2].mxu0 }
 0x1b0   : > { %v525_v52 = vmul.f32 %v866_v51, %v509_v48  ;;  %v437_v53 = vpop.f32.mrb[3].mxu0 }
 0x1b1   : > { %954 = vmatpush3.bf16.xpose.msra.mxu1 %v953_v50  ;;  %v524_v54 = vmul.f32 %v508_v49, %v437_v53 }
 0x1b2   : > { %955 = vmatprep.subr.bf16.mxu1 %v1277_v40 }
 0x1b3   : > { %v956_v57 = vpack.c.bf16 %v525_v52, %v524_v54  ;;  %v869_v58 = vpop.f32.mrb[4].mxu0 }
 0x1b4   : > { %v527_v59 = vmul.f32 %v869_v58, %v511_v55  ;;  %v447_v60 = vpop.f32.mrb[5].mxu0 }
 0x1b5   : > { %v526_v61 = vmul.f32 %v510_v56, %v447_v60 }
 0x1b7   : > { %v959_v0 = vpack.c.bf16 %v527_v59, %v526_v61  ;;  %v872_v1 = vpop.f32.mrb[6].mxu0 }
 0x1b8   : > { %v529_v2 = vmul.f32 %v872_v1, %v513_v62  ;;  %v457_v3 = vpop.f32.mrb[7].mxu0 }
 0x1b9   : > { %957 = vmatpush3.bf16.xpose.msra.mxu1 %v956_v57  ;;  %v528_v4 = vmul.f32 %v512_v63, %v457_v3 }
 0x1ba   : > { %958 = vmatprep.subr.bf16.mxu1 %v1277_v40 }
 0x1bb   : > { %v962_v7 = vpack.c.bf16 %v529_v2, %v528_v4  ;;  %v875_v8 = vpop.f32.mrb[8].mxu0 }
 0x1bc   : > { %v531_v9 = vmul.f32 %v875_v8, %v515_v5  ;;  %v467_v10 = vpop.f32.mrb[9].mxu0 }
 0x1bd   : > { %v530_v11 = vmul.f32 %v514_v6, %v467_v10 }
 0x1bf   : > { %v965_v14 = vpack.c.bf16 %v531_v9, %v530_v11  ;;  %v878_v15 = vpop.f32.mrb[10].mxu0 }
 0x1c0   : > { %v533_v16 = vmul.f32 %v878_v15, %v517_v12  ;;  %v477_v17 = vpop.f32.mrb[11].mxu0 }
 0x1c1   : > { %960 = vmatpush3.bf16.xpose.msra.mxu1 %v959_v0  ;;  %v532_v18 = vmul.f32 %v516_v13, %v477_v17 }
 0x1c2   : > { %961 = vmatprep.subr.bf16.mxu1 %v1277_v40 }
 0x1c3   : > { %v968_v21 = vpack.c.bf16 %v533_v16, %v532_v18  ;;  %v881_v22 = vpop.f32.mrb[12].mxu0 }
 0x1c4   : > { %v535_v23 = vmul.f32 %v881_v22, %v519_v19  ;;  %v487_v24 = vpop.f32.mrb[13].mxu0 }
 0x1c5   : > { %v534_v25 = vmul.f32 %v518_v20, %v487_v24 }
 0x1c7   : > { %v971_v28 = vpack.c.bf16 %v535_v23, %v534_v25  ;;  %v884_v29 = vpop.f32.mrb[14].mxu0 }
 0x1c8   : > { %v537_v30 = vmul.f32 %v884_v29, %v521_v26  ;;  %v497_v31 = vpop.f32.mrb[15].mxu0 }
 0x1c9   : > { %963 = vmatpush3.bf16.xpose.msra.mxu1 %v962_v7  ;;  %v536_v32 = vmul.f32 %v520_v27, %v497_v31 }
 0x1ca   : > { %964 = vmatprep.subr.bf16.mxu1 %v1277_v40 }
 0x1cb   : > { %v974_v33 = vpack.c.bf16 %v537_v30, %v536_v32 }
 0x1d1   : > { %966 = vmatpush3.bf16.xpose.msra.mxu1 %v965_v14 }
 0x1d2   : > { %967 = vmatprep.subr.bf16.mxu1 %v1277_v40 }
 0x1d9   : > { %969 = vmatpush3.bf16.xpose.msra.mxu1 %v968_v21 }
 0x1da   : > { %970 = vmatprep.subr.bf16.mxu1 %v1277_v40 }
 0x1e1   : > { %972 = vmatpush3.bf16.xpose.msra.mxu1 %v971_v28 }
 0x1e2   : > { %973 = vmatprep.subr.bf16.mxu1 %v1277_v40 }
 0x1e9   : > { %975 = vmatpush3.bf16.xpose.msra.mxu1 %v974_v33 }
 0x1f0   : > { %918 = vmatmul.mubr.f32.vlgmr.msra.gmra.mrb[0].mxu1 %v538_v34 }
 0x2c3   : > { %v605_v35 = vpop.f32.mrb[0].mxu1 }
 0x2c4   : > { %v919_v36 = vpop.f32.mrb[1].mxu1  ;;  %611 = vst [vmem:[#allocation2] sm:$0xff] %v605_v35 }
 0x2cb   : > { %v615_v37 = vld [vmem:[#allocation2] sm:$0x1] }
 0x2cc   : > { %616 = vst [vmem:[%s313_s27] sm:$0x1] %v615_v37 }
 0x2cd   : > { %1188 = shalt.err (!%p1185_p13)
}
 0x2ce   : > { %s1189_s22 = scalar_lea.hbm %s1596_s11, 16  ;;  %s1193_s9 = scalar_lea.hbm %s1648_s4, 128 }
 0x2cf   : > { %p1190_p12 = scmp.ne.s32.totalorder %s1596_s11, %s1189_s22  ;;  %p1194_p2 = scmp.lt.u32.totalorder %s1596_s11, %s1648_s4 }
 0x2d0   : > { %p1195_p6 = scmp.lt.u32.totalorder %s1193_s9, %s1189_s22  ;;  %p1197_p9 = scmp.lt.u32.totalorder %s1189_s22, %s1596_s11 }
 0x2d1   : > { %p1191_p1 = pnand %p1190_p12, %p1671_p4 }
 0x2d2   : > { %p1196_p8 = por %p1195_p6, %p1194_p2 }
 0x2d3   : > { %p1192_p5 = pneg %p1191_p1 }
 0x2d4   : > { %p1198_p0 = por %p1197_p9, %p1196_p8 }
 0x2d6   : > { %p1199_p11 = pnand %p1198_p0, %p1192_p5 }
 0x2d8   : > { %1202 = shalt.err (!%p1199_p11)
}
 0x2d9   : > { %986 = dma.vmem_to_hbm [thread:$0]  (%p1671_p4), %s1598_s14, 16, %s1596_s11, %s618_s0  }
 0x2da PF: > { %p1003_p3 = scmp.ge.s32.totalorder %s1265_s20, 2  ;;  %s642_s13 = sand.u32 1, %s1245_s15  }
 0x2db   : > { %p1672_p7 = scmp.ne.s32.totalorder %s1658_s30, 0  ;;  %s643_s5 = scalar_lea.sflag [#allocation5], %s642_s13 }
 0x2dd   : > { %p996_p10 = pnand %p1003_p3, %p1672_p7 }
 0x2df   : > { %1240 = dma.done.wait (!%p996_p10), %s643_s5, 16  }
 0x2e0   : > { %1242 = vsyncadd (!%p996_p10), %s643_s5, 4294967280  ;;  %s22_s20 = sadd.s32 1, %s1265_s20   ;;  %s1673_s15 = smov %s1249_s16 }
 0x2e1   : > { %p19_p13 = scmp.ge.s32.totalorder %s22_s20, 10   ;;  %s1674_s16 = smov %s1253_s17 }
 0x2e2   : > { %s1675_s17 = smov %s1368_s29  ;;  %s1676_s18 = smov %s1261_s19 }
 0x2e3   : > { %s1677_s19 = smov %s1679_s23  ;;  %21 = sbr.rel (!%p19_p13) target bundleno = 11 (0xb), region = 110 }
 0x2ea   :  { %647 = vsyncpa [#allocation4], 1 }
 0x2eb   :  { %649 = vsyncpa [#allocation4 + $0x1], 1 }
 0x2ec   :  { %650 = vsyncpa [#allocation7], 1 }
 0x2ed   :  { %652 = vsyncpa [#allocation7 + $0x1], 1 }
 0x2ee   :  { %653 = vsyncpa [#allocation10], 1 }
 0x2ef   :  { %654 = vsyncpa [#allocation5], 1 }
 0x2f0   :  { %656 = vsyncpa [#allocation5 + $0x1], 1 }

</bundles_post_ra>
